<compile_context>
chip_gen: v6e
topology: v6e:2x2x1
jax: 0.10.0
libtpu: 0.0.40
codegen_flags: <defaults>
</compile_context>

<pallas_src>
import functools

import jax
import jax.numpy as jnp
from jax.experimental import pallas as pl
from jax.experimental.pallas import tpu as pltpu

_LANE = 128
_TK_MAX = 2048   # cap on the K (reduction) tile of W^T  -> streamed dim
_TM_MAX = 512    # cap on the output-feature tile
_TB_MAX = 512    # cap on the batch tile


def _round_up(x, m):
    return -(-x // m) * m


def _sublane_multiple(dtype):
    # (8, 128) native tile for 4-byte, (16, 128) for 2-byte, (32, 128) for 1-byte.
    return max(8, 32 // jnp.dtype(dtype).itemsize)


def _vmem_budget_bytes():
    """Generation-aware VMEM budget (~half of physical VMEM, capped)."""
    try:
        phys = int(pltpu.get_tpu_info().vmem_capacity_bytes)
    except Exception:
        phys = 64 * 1024 * 1024  # conservative: v7x-sized VMEM
    return max(16 * 1024 * 1024, min(phys // 2, 64 * 1024 * 1024))


def _choose_tile(dim, cap, granule=_LANE, max_waste_frac=1.0 / 16.0):
    """Largest tile (multiple of `granule`, <= cap) whose padding waste on
    `dim` is small.  `dim` must already be a multiple of `granule`.
    Returns (tile, padded_dim)."""
    cap = max(granule, min(cap, dim))
    cap = (cap // granule) * granule
    tol = max(0, int(dim * max_waste_frac))
    for t in range(cap, granule - 1, -granule):
        padded = _round_up(dim, t)
        if padded - dim <= tol:
            return t, padded
    return granule, dim


# --------------------------------------------------------------------------- #
# Kernels                                                                     #
# --------------------------------------------------------------------------- #
def _matmul_kernel(x_ref, wt_ref, o_ref, acc_ref):
    # x_ref: (tb, tk), wt_ref: (tk, tm), o_ref: (tb, tm), acc_ref: f32 (tb, tm)
    k = pl.program_id(2)

    @pl.when(k == 0)
    def _():
        acc_ref[...] = jnp.zeros_like(acc_ref)

    acc_ref[...] += jnp.dot(
        x_ref[...], wt_ref[...], preferred_element_type=jnp.float32
    )

    @pl.when(k == pl.num_programs(2) - 1)
    def _():
        o_ref[...] = acc_ref[...].astype(o_ref.dtype)


def _matmul_kernel_single_k(x_ref, wt_ref, o_ref):
    # Single reduction step: no accumulator scratch needed.
    o_ref[...] = jnp.dot(
        x_ref[...], wt_ref[...], preferred_element_type=jnp.float32
    ).astype(o_ref.dtype)


@functools.partial(
    jax.jit, static_argnames=("tb", "tk", "tm", "out_dtype", "vmem_limit")
)
def _pallas_matmul(x_p, wt_p, *, tb, tk, tm, out_dtype, vmem_limit):
    """y = x_p @ wt_p on padded, tile-aligned shapes.

    x_p: (Bp, Np), wt_p: (Np, Mp); Bp % tb == Np % tk == Mp % tm == 0.
    """
    Bp, Np = x_p.shape
    _, Mp = wt_p.shape
    nm, nb, nk = Mp // tm, Bp // tb, Np // tk

    flops = 2 * Bp * Np * Mp
    # Real HBM traffic: W^T is streamed once per B tile, x once per M tile.
    bytes_accessed = (
        wt_p.size * wt_p.dtype.itemsize * nb
        + x_p.size * x_p.dtype.itemsize * nm
        + Bp * Mp * jnp.dtype(out_dtype).itemsize
    )
    cost = pl.CostEstimate(
        flops=flops, transcendentals=0, bytes_accessed=bytes_accessed
    )

    if nk == 1:
        # TODO(synk): consider pipeline_mode=pl.Buffered(3) on the W^T spec on
        # v5e/v6e if DMA is still exposed after the larger tiles.
        return pl.pallas_call(
            _matmul_kernel_single_k,
            out_shape=jax.ShapeDtypeStruct((Bp, Mp), out_dtype),
            grid=(nm, nb),
            in_specs=[
                pl.BlockSpec((tb, tk), lambda i, j: (j, 0)),  # x tile
                pl.BlockSpec((tk, tm), lambda i, j: (0, i)),  # W^T tile
            ],
            out_specs=pl.BlockSpec((tb, tm), lambda i, j: (j, i)),
            compiler_params=pltpu.CompilerParams(
                dimension_semantics=("parallel", "parallel"),
                vmem_limit_bytes=vmem_limit,
            ),
            cost_estimate=cost,
        )(x_p, wt_p)

    return pl.pallas_call(
        _matmul_kernel,
        out_shape=jax.ShapeDtypeStruct((Bp, Mp), out_dtype),
        grid=(nm, nb, nk),  # reduction axis (k) last
        in_specs=[
            pl.BlockSpec((tb, tk), lambda i, j, k: (j, k)),  # x tile
            pl.BlockSpec((tk, tm), lambda i, j, k: (k, i)),  # W^T tile
        ],
        out_specs=pl.BlockSpec((tb, tm), lambda i, j, k: (j, i)),
        scratch_shapes=[pltpu.VMEM((tb, tm), jnp.float32)],
        compiler_params=pltpu.CompilerParams(
            dimension_semantics=("parallel", "parallel", "arbitrary"),
            vmem_limit_bytes=vmem_limit,
        ),
        cost_estimate=cost,
    )(x_p, wt_p)


# --------------------------------------------------------------------------- #
# LinearOperator                                                              #
# --------------------------------------------------------------------------- #
class LinearOperator:
    """JAX/Pallas port of the PyTorch LinearOperator forward() semantics.

    `forward_fun` maps an array of shape `input_shape` to an output; the
    batched case (one extra leading dim) is handled like torch.vmap.
    """

    def __init__(self, input_shape, forward_fun, output_shape=None,
                 dtype=jnp.float32):
        self.input_shape = tuple(input_shape)
        self.output_shape = output_shape
        self.forward_fun = forward_fun
        self.dtype = dtype

    # ------------------------------------------------------------------ #
    # Dense instantiation: y = W @ x via the Pallas tiled matmul kernel.  #
    # ------------------------------------------------------------------ #
    @classmethod
    def Dense(cls, weight, compute_dtype=None):
        weight = jnp.asarray(weight)
        M, N = weight.shape
        orig_dtype = weight.dtype
        if compute_dtype is None:
            # NOTE: pass compute_dtype=jnp.bfloat16 to halve W-streaming HBM
            # traffic in the mem-bound matvec regime (f32 accumulation kept).
            compute_dtype = orig_dtype
        compute_dtype = jnp.dtype(compute_dtype)
        itemsize = compute_dtype.itemsize

        budget = _vmem_budget_bytes()

        # Pad features only to the 128-lane granule; tiles are picked as
        # (near-)divisors of the padded dims so (almost) no zero data of W^T
        # is streamed from HBM on every call.
        Np128 = _round_up(N, _LANE)
        Mp128 = _round_up(M, _LANE)

        # Large K (streamed) tile to amortize per-grid-step overhead.
        tk, Np = _choose_tile(Np128, _TK_MAX)

        # M tile: cap so there are >= 2 M tiles whenever M allows, so the
        # "parallel" M axis shards across v7x's two TensorCores.
        tm_cap = _TM_MAX
        if Mp128 >= 2 * _LANE:
            tm_cap = min(tm_cap, (Mp128 // 2 // _LANE) * _LANE)
        tm, Mp = _choose_tile(Mp128, tm_cap)

        # Keep the double-buffered working set inside the VMEM budget
        # (conservatively sized with the maximum batch tile).
        def _working_set(tb_, tk_, tm_):
            return (2 * (tb_ * tk_ + tk_ * tm_) * itemsize     # x + W^T, 2-buf
                    + 2 * tb_ * tm_ * jnp.dtype(jnp.float32).itemsize  # out
                    + tb_ * tm_ * 4)                            # f32 accumulator

        while tk > _LANE and _working_set(_TB_MAX, tk, tm) > budget:
            tk, Np = _choose_tile(Np128, tk - _LANE)

        # Hoist + materialize the padded, transposed (and possibly bf16-cast)
        # weight ONCE at construction time -> one-time HBM cost.
        w_t = weight.astype(compute_dtype).T
        if (Np - N) or (Mp - M):
            w_t = jnp.pad(w_t, ((0, Np - N), (0, Mp - M)))
        w_t = jax.block_until_ready(jax.device_put(w_t))

        sub = _sublane_multiple(compute_dtype)

        def _apply(xb):
            # xb: (B, N) -> (B, M)
            B = xb.shape[0]
            out_dtype = jnp.promote_types(xb.dtype, orig_dtype)
            # Near-equal batch tiles: waste per tile < one sublane granule,
            # so no ~2x blow-up for B just above a clamp.
            Bsub = _round_up(B, sub)
            n_b = -(-Bsub // _TB_MAX)
            tb = _round_up(-(-Bsub // n_b), sub)
            Bp = tb * n_b

            x_p = xb.astype(compute_dtype)
            if (Bp - B) or (Np - N):
                x_p = jnp.pad(x_p, ((0, Bp - B), (0, Np - N)))
            y_p = _pallas_matmul(x_p, w_t, tb=tb, tk=tk, tm=tm,
                                 out_dtype=out_dtype, vmem_limit=budget)
            if (Bp - B) or (Mp - M):
                y_p = y_p[:B, :M]
            return y_p

        def fwd(x):
            # x: (N,) -> y: (M,)
            return _apply(x.reshape(1, N))[0]

        def fwd_batched(xb):
            # xb: (B, N) -> (B, M)   (equivalent of torch.vmap(forward_fun))
            return _apply(xb)

        op = cls((N,), fwd, output_shape=(M,), dtype=orig_dtype)
        op._batched_forward_fun = fwd_batched
        return op

    @classmethod
    def Identity(cls, input_shape, dtype=jnp.float32):
        return cls(input_shape, forward_fun=lambda x: x, dtype=dtype)

    def forward(self, x):
        if x.ndim == len(self.input_shape):
            return self.forward_fun(x.reshape(*self.input_shape))
        elif x.ndim == len(self.input_shape) + 1:
            xb = x.reshape(-1, *self.input_shape)
            batched = getattr(self, "_batched_forward_fun", None)
            if batched is not None:
                return batched(xb)
            return jax.vmap(self.forward_fun)(xb)
        else:
            raise ValueError(
                f"Invalid input shape {x.shape}, expected {self.input_shape} "
                f"or {(1,) + self.input_shape}"
            )

    # TODO(synk): adjoint/transpose/compose/add use torch.func.vjp + operator
    # algebra on arbitrary callables; only forward() is lowered to Pallas here.

    def __call__(self, x):
        return self.forward(x)

    def __matmul__(self, x):
        return self.forward(x)

    def __mul__(self, x):
        return self.forward(x)

    def matmul(self, x):
        return self.forward(x)

    def __repr__(self):
        return f"{self.__class__.__name__}({self.input_shape})"


if __name__ == "__main__":
    key = jax.random.PRNGKey(0)
    k_w, k_x = jax.random.split(key)

    B, N, M = 2, 32, 32  # small shapes: batch=2, hidden=32

    # Deterministic synthetic weight for the dense linear operator.
    W = jax.random.normal(k_w, (M, N), dtype=jnp.float32)
    op = LinearOperator.Dense(W)

    # Batched input (ndim == len(input_shape) + 1  ->  vmap path).
    x_batched = jax.random.normal(k_x, (B, N), dtype=jnp.float32)
    y_batched = op(x_batched)
    jax.block_until_ready(y_batched)

    # Unbatched input (ndim == len(input_shape) path).
    y_single = op(x_batched[0])
    jax.block_until_ready(y_single)

    # Reference check against plain JAX.
    ref_batched = x_batched @ W.T
    ref_single = W @ x_batched[0]
    assert y_batched.shape == (B, M)
    assert y_single.shape == (M,)
    assert jnp.allclose(y_batched, ref_batched, atol=1e-4, rtol=1e-4)
    assert jnp.allclose(y_single, ref_single, atol=1e-4, rtol=1e-4)

    # bf16-weight compute path (f32 accumulation): halves HBM traffic for W.
    op_bf16 = LinearOperator.Dense(W, compute_dtype=jnp.bfloat16)
    y_bf16 = op_bf16(x_batched)
    jax.block_until_ready(y_bf16)
    assert y_bf16.shape == (B, M)
    assert jnp.allclose(y_bf16, ref_batched, atol=0.25, rtol=0.05)

    # Larger, K-tiled shape exercises the multi-K accumulator kernel and the
    # near-divisor tile/padding selection (N=384 -> 3 K tiles of 128 at most).
    M2, N2, B2 = 384, 384, 9
    W2 = jax.random.normal(k_w, (M2, N2), dtype=jnp.float32)
    op2 = LinearOperator.Dense(W2)
    x2 = jax.random.normal(k_x, (B2, N2), dtype=jnp.float32)
    y2 = op2(x2)
    jax.block_until_ready(y2)
    assert y2.shape == (B2, M2)
    assert jnp.allclose(y2, x2 @ W2.T, atol=1e-3, rtol=1e-3)

    # Identity operator uses the generic (non-Pallas) dispatch path.
    op_id = LinearOperator.Identity((N,))
    y_id = op_id(x_batched)
    assert jnp.allclose(y_id, x_batched)

    print("KERNEL_OK")
</pallas_src>

<mosaic_0001>
module attributes {stable_mosaic.version = 11 : i64} {
  func.func @_matmul_kernel_single_k(%arg0: i32, %arg1: i32, %arg2: memref<8x128xf32, #tpu.memory_space<vmem>>, %arg3: memref<128x128xf32, #tpu.memory_space<vmem>>, %arg4: memref<8x128xf32, #tpu.memory_space<vmem>>) attributes {dimension_semantics = [#tpu.dimension_semantics<parallel>, #tpu.dimension_semantics<parallel>], iteration_bounds = array<i64: 1, 1>, scalar_prefetch = 0 : i64, scratch_operands = 0 : i64, tpu.core_type = #tpu.core_type<tc>, window_params = [{transform_indices = @transform_0, window_bounds = array<i64: 8, 128>}, {transform_indices = @transform_1, window_bounds = array<i64: 128, 128>}, {transform_indices = @transform_2, window_bounds = array<i64: 8, 128>}]} {
    %c0 = arith.constant 0 : index
    %c0_0 = arith.constant 0 : index
    %0 = vector.load %arg2[%c0, %c0_0] : memref<8x128xf32, #tpu.memory_space<vmem>>, vector<8x128xf32>
    %c0_1 = arith.constant 0 : index
    %c0_2 = arith.constant 0 : index
    %1 = vector.load %arg3[%c0_1, %c0_2] : memref<128x128xf32, #tpu.memory_space<vmem>>, vector<128x128xf32>
    %cst = arith.constant dense<0.000000e+00> : vector<8x128xf32>
    %2 = tpu.matmul %0, %1, %cst {dimension_numbers = #tpu.dot_dimension_numbers<[1], [0], [0], [1], [0, 0, 1, 1], [], []>} : vector<8x128xf32>, vector<128x128xf32>, vector<8x128xf32> -> vector<8x128xf32>
    %c0_3 = arith.constant 0 : index
    %c0_4 = arith.constant 0 : index
    %3 = vector.load %arg4[%c0_3, %c0_4] : memref<8x128xf32, #tpu.memory_space<vmem>>, vector<8x128xf32>
    tpu.vector_store %arg4[%c0_3, %c0_4], %2 {strides = array<i32>} : memref<8x128xf32, #tpu.memory_space<vmem>>, vector<8x128xf32>,
    return
  }
  func.func @transform_0(%arg0: i32, %arg1: i32) -> (i32, i32) {
    %c0_i32 = arith.constant 0 : i32
    %c0_i32_0 = arith.constant 0 : i32
    return %arg1, %c0_i32 : i32, i32
  }
  func.func @transform_1(%arg0: i32, %arg1: i32) -> (i32, i32) {
    %c0_i32 = arith.constant 0 : i32
    %c0_i32_0 = arith.constant 0 : i32
    return %c0_i32, %arg0 : i32, i32
  }
  func.func @transform_2(%arg0: i32, %arg1: i32) -> (i32, i32) {
    %c0_i32 = arith.constant 0 : i32
    return %arg1, %arg0 : i32, i32
  }
}

</mosaic_0001>

<bundles_post_ra>
// kernel: _pallas_matmul.1
= control target key start
LH: loop header
LB: loop body
LE: loop exit
PB: predicated region body
PF: predicated region fallthrough
CT: control target
= control target key end

     0   :  { %7 = vsyncpa [#allocation3], 0  ;;  %s298_s0 = inlined_call_operand.hbm [shape: f32[8,128], index: 0, kind: input, shape index: {}]   ;;  %s299_s1 = inlined_call_operand.hbm [shape: f32[128,128], index: 1, kind: input, shape index: {}]   ;;  %s300_s2 = inlined_call_operand.hbm [shape: f32[8,128], index: 2, kind: output, shape index: {}]  }
   0x1   :  { %8 = vsyncpa [#allocation6], 0 }
   0x2   :  { %9 = vsyncpa [#allocation4], 0  ;;  %s267_s9 = smov [#allocation2]   ;;  %s268_s11 = smov [#allocation5]  }
   0x3   :  { %s16_s10 = sshll.u32 %s267_s9, 4  ;;  %s25_s12 = sshll.u32 %s268_s11, 4  ;;  %s17_s10 = int_to_ptr.vmem [resolvable:$true] %s16_s10  ;;  %s26_s12 = int_to_ptr.vmem [resolvable:$true] %s25_s12 }
   0x4   :  { %s209_s13 = scalar_lea.vmem %s17_s10, 128  ;;  %p214_p1 = scmp.lt.s32.totalorder %s17_s10, %s17_s10 }
   0x5   :  { %p210_p0 = scmp.ne.s32.totalorder %s17_s10, %s209_s13  ;;  %p215_p2 = scmp.lt.s32.totalorder %s209_s13, %s209_s13 }
   0x7   :  { %p216_p3 = por %p215_p2, %p214_p1 }
   0x9   :  { %p217_p4 = pnand %p216_p3, %p210_p0 }
   0xb   :  { %220 = shalt.err (!%p217_p4)
}
   0xc   :  { %19 = dma.hbm_to_vmem [thread:$0]  %s298_s0, 128, %s17_s10, [#allocation3]  }
   0xd   :  { %s229_s16 = scalar_lea.vmem %s26_s12, 2048  ;;  %p234_p6 = scmp.lt.s32.totalorder %s26_s12, %s26_s12 }
   0xe   :  { %p230_p5 = scmp.ne.s32.totalorder %s26_s12, %s229_s16  ;;  %p235_p7 = scmp.lt.s32.totalorder %s229_s16, %s229_s16 }
  0x10   :  { %p236_p8 = por %p235_p7, %p234_p6 }
  0x12   :  { %p237_p9 = pnand %p236_p8, %p230_p5 }
  0x14   :  { %240 = shalt.err (!%p237_p9)
}
  0x15   :  { %s269_s17 = smov 128   ;;  %s270_s18 = smov 8  }
  0x16   :  { %31 = dma.hbm_to_vmem [thread:$0]  %s299_s1, 2048, %s26_s12, [#allocation6], %s269_s17, %s269_s17, %s270_s18  }
  0x17   :  { %261 = dma.done.wait [#allocation3], 128  }
  0x18   :  { %262 = vsyncadd [#allocation3], 4294967168 }
  0x19   :  { %263 = dma.done.wait [#allocation6], 2048  }
  0x1a   :  { %264 = vsyncadd [#allocation6], 4294965248  ;;  %v271_v0 = vmov 0.0   ;;  %vm272_vm0 = vmmov 0   ;;  %v54_v1 = vld [vmem:[#allocation5 + $0x78] sm:$0xff]  ;;  %v53_v2 = vld [vmem:[#allocation5 + $0x70] sm:$0xff] }
  0x1b   :  { %159 = vmatprep.subr.mxu0 %v271_v0  ;;  %191 = vmatprep.mubr.msk.f32.mxu0 %vm272_vm0, %v271_v0  ;;  %v52_v3 = vld [vmem:[#allocation5 + $0x68] sm:$0xff]  ;;  %v51_v4 = vld [vmem:[#allocation5 + $0x60] sm:$0xff]  ;;  %v50_v5 = vld [vmem:[#allocation5 + $0x58] sm:$0xff]  ;;  %s273_s0 = smov [#allocation7]  }
  0x1c   :  { %160 = vmatpush3.msra.mxu0 %v54_v1  ;;  %v49_v6 = vld [vmem:[#allocation5 + $0x50] sm:$0xff]  ;;  %v48_v7 = vld [vmem:[#allocation5 + $0x48] sm:$0xff]  ;;  %v47_v8 = vld [vmem:[#allocation5 + $0x40] sm:$0xff]  ;;  %s132_s1 = sshll.u32 %s273_s0, 4  ;;  %s133_s1 = int_to_ptr.vmem [resolvable:$true] %s132_s1 }
  0x1d   :  { %161 = vmatprep.subr.mxu0 %v271_v0  ;;  %v46_v9 = vld [vmem:[#allocation5 + $0x38] sm:$0xff]  ;;  %v45_v10 = vld [vmem:[#allocation5 + $0x30] sm:$0xff]  ;;  %v44_v11 = vld [vmem:[#allocation5 + $0x28] sm:$0xff]  ;;  %s241_s21 = scalar_lea.vmem %s133_s1, 128  ;;  %p246_p11 = scmp.lt.s32.totalorder %s133_s1, %s133_s1 }
  0x1e   :  { %162 = vmatpush3.msra.mxu0 %v53_v2  ;;  %v43_v12 = vld [vmem:[#allocation5 + $0x20] sm:$0xff]  ;;  %v42_v13 = vld [vmem:[#allocation5 + $0x18] sm:$0xff]  ;;  %v41_v14 = vld [vmem:[#allocation5 + $0x10] sm:$0xff]  ;;  %p242_p10 = scmp.ne.s32.totalorder %s133_s1, %s241_s21  ;;  %p247_p12 = scmp.lt.s32.totalorder %s241_s21, %s241_s21 }
  0x1f   :  { %163 = vmatprep.subr.mxu0 %v271_v0  ;;  %v40_v15 = vld [vmem:[#allocation5 + $0x8] sm:$0xff]  ;;  %v39_v16 = vld [vmem:[#allocation5] sm:$0xff]  ;;  %v38_v17 = vld [vmem:[#allocation2] sm:$0xff] }
  0x20   :  { %164 = vmatpush3.msra.mxu0 %v52_v3  ;;  %p248_p13 = por %p247_p12, %p246_p11 }
  0x21   :  { %165 = vmatprep.subr.mxu0 %v271_v0 }
  0x22   :  { %166 = vmatpush3.msra.mxu0 %v51_v4  ;;  %p249_p0 = pnand %p248_p13, %p242_p10 }
  0x23   :  { %167 = vmatprep.subr.mxu0 %v271_v0 }
  0x24   :  { %168 = vmatpush3.msra.mxu0 %v50_v5 }
  0x25   :  { %169 = vmatprep.subr.mxu0 %v271_v0 }
  0x26   :  { %170 = vmatpush3.msra.mxu0 %v49_v6 }
  0x27   :  { %171 = vmatprep.subr.mxu0 %v271_v0 }
  0x28   :  { %172 = vmatpush3.msra.mxu0 %v48_v7 }
  0x29   :  { %173 = vmatprep.subr.mxu0 %v271_v0 }
  0x2a   :  { %174 = vmatpush3.msra.mxu0 %v47_v8 }
  0x2b   :  { %175 = vmatprep.subr.mxu0 %v271_v0 }
  0x2c   :  { %176 = vmatpush3.msra.mxu0 %v46_v9 }
  0x2d   :  { %177 = vmatprep.subr.mxu0 %v271_v0 }
  0x2e   :  { %178 = vmatpush3.msra.mxu0 %v45_v10 }
  0x2f   :  { %179 = vmatprep.subr.mxu0 %v271_v0 }
  0x30   :  { %180 = vmatpush3.msra.mxu0 %v44_v11 }
  0x31   :  { %181 = vmatprep.subr.mxu0 %v271_v0 }
  0x32   :  { %182 = vmatpush3.msra.mxu0 %v43_v12 }
  0x33   :  { %183 = vmatprep.subr.mxu0 %v271_v0 }
  0x34   :  { %184 = vmatpush3.msra.mxu0 %v42_v13 }
  0x35   :  { %185 = vmatprep.subr.mxu0 %v271_v0 }
  0x36   :  { %186 = vmatpush3.msra.mxu0 %v41_v14 }
  0x37   :  { %187 = vmatprep.subr.mxu0 %v271_v0 }
  0x38   :  { %188 = vmatpush3.msra.mxu0 %v40_v15 }
  0x39   :  { %189 = vmatprep.subr.mxu0 %v271_v0 }
  0x3a   :  { %190 = vmatpush3.msra.mxu0 %v39_v16 }
  0x3b   :  { %192 = vmatmul.mubr.f32.vlgmr.msra.gmra.mxu0 %v38_v17 }
  0xfb   :  { %v121_v18 = vpop.f32.mrf.mxu0 }
  0xfc   :  { %125 = vst [vmem:[#allocation7] sm:$0xff] %v121_v18 }
  0xfd   :  { %v193_v19 = vpop.f32.mrf.mxu0 }
  0xfe   :  { %252 = shalt.err (!%p249_p0)
}
  0xff   :  { %135 = dma.vmem_to_hbm [thread:$0]  %s133_s1, 128, %s300_s2, [#allocation4]  }
 0x100   :  { %265 = dma.done.wait [#allocation4], 128  }
 0x101   :  { %266 = vsyncadd [#allocation4], 4294967168 }
 0x102   :  { %139 = vsyncpa [#allocation3], 1 }
 0x103   :  { %140 = vsyncpa [#allocation6], 1 }
 0x104   :  { %141 = vsyncpa [#allocation4], 1 }

</bundles_post_ra>
